<compile_context>
chip_gen: v6e
topology: v6e:2x2x1
jax: 0.10.0
libtpu: 0.0.40
codegen_flags: <defaults>
</compile_context>

<pallas_src>
import jax
import jax.numpy as jnp
from jax.experimental import pallas as pl
from jax.experimental.pallas import tpu as pltpu


def _round_up(n, m):
    return ((n + m - 1) // m) * m


def _cdiv(a, b):
    return (a + b - 1) // b


def _pad2(arr, rows, cols):
    r, c = arr.shape
    if r == rows and c == cols:
        return arr
    return jnp.zeros((rows, cols), arr.dtype).at[:r, :c].set(arr)


# ---------------------------------------------------------------------------
# Kernel
# ---------------------------------------------------------------------------
def _qvalue_kernel(x_ref, a_ref, w1x_ref, w1a_ref, b1_ref, w2_ref, b2_ref,
                   wo_ref, bo_ref, out_ref):
    bf16 = jnp.bfloat16
    f32 = jnp.float32

    # fc1: split over the (state | action) row blocks of w1 — bf16 MXU, f32 accumulation.
    h = jnp.dot(x_ref[...].astype(bf16), w1x_ref[...], preferred_element_type=f32)
    h = h + jnp.dot(a_ref[...].astype(bf16), w1a_ref[...], preferred_element_type=f32)
    h = jnp.maximum(h + b1_ref[...], 0.0)                       # f32 VPU (v5e-safe)

    # fc2: the dominant matmul — bf16 MXU, f32 accumulation.
    h = jnp.dot(h.astype(bf16), w2_ref[...], preferred_element_type=f32)
    h = jnp.maximum(h + b2_ref[...], 0.0)

    # fc_out: single output column -> VPU multiply + lane reduction (keeps the MXU free
    # instead of an [H_P, 128] matmul with 127 zero columns).
    q = jnp.sum(h * wo_ref[...], axis=-1, keepdims=True)        # [TB, 1] f32
    # Broadcast against the [1, OUT_W] bias row to produce a small lane-dense output slab.
    out_ref[...] = (q + bo_ref[...]).astype(out_ref.dtype)


# ---------------------------------------------------------------------------
# Parameter preparation (hoisted out of the per-call hot path)
# ---------------------------------------------------------------------------
def prepare_params(w1, b1, w2, b2, wo, bo, *, state_dim, action_dim):
    """Pad / split / cast the QValueNet weights once.

    Weights come pre-transposed as [in, out] (matching y = x @ W.T + b of torch Linear),
    biases as [1, out]. Returns a dict of device arrays consumed by q_value_net.
    """
    in_dim = state_dim + action_dim
    hid = w1.shape[1]                       # == 2 * hidden_dim
    assert w1.shape == (in_dim, hid), w1.shape
    assert b1.shape == (1, hid), b1.shape
    assert w2.shape == (hid, hid), w2.shape
    assert b2.shape == (1, hid), b2.shape
    assert wo.shape == (hid, 1), wo.shape
    assert bo.shape == (1, 1), bo.shape

    FEAT_ALIGN, LANE, OUT_W = 16, 128, 8    # 16 = bf16 sublane tile
    S_P = _round_up(state_dim, FEAT_ALIGN)
    A_P = _round_up(action_dim, FEAT_ALIGN)
    H_P = _round_up(hid, LANE)

    f32, bf16 = jnp.float32, jnp.bfloat16
    w1x = jnp.zeros((S_P, H_P), bf16).at[:state_dim, :hid].set(w1[:state_dim].astype(bf16))
    w1a = jnp.zeros((A_P, H_P), bf16).at[:action_dim, :hid].set(w1[state_dim:].astype(bf16))
    b1p = jnp.zeros((1, H_P), f32).at[:, :hid].set(b1.astype(f32))
    w2p = jnp.zeros((H_P, H_P), bf16).at[:hid, :hid].set(w2.astype(bf16))
    b2p = jnp.zeros((1, H_P), f32).at[:, :hid].set(b2.astype(f32))
    wo_row = jnp.zeros((1, H_P), f32).at[:, :hid].set(wo.astype(f32).T)   # kept f32 (tiny)
    bo_row = jnp.tile(bo.astype(f32), (1, OUT_W))

    return {"w1x": w1x, "w1a": w1a, "b1": b1p, "w2": w2p, "b2": b2p,
            "wo_row": wo_row, "bo_row": bo_row}


# ---------------------------------------------------------------------------
# Batch tiling choice
# ---------------------------------------------------------------------------
def _choose_batch_tiling(B, s_p, a_p, h_p, out_w):
    SUB = 8
    TB_MAX = 1024                      # big tiles amortise the ~0.35 us per-grid-step overhead
    VMEM_BUDGET = 40 * 1024 * 1024     # conservative across v5e/v6e/v7x (v7x has 64 MiB physical)

    b8 = _round_up(max(B, 1), SUB)

    # Resident weights (double-buffered by the default pipeliner even though their block
    # index never changes): bf16 matrices + f32 bias/row vectors.
    weight_bytes = 2 * (((s_p + a_p) * h_p + h_p * h_p) * 2 + (3 * h_p + out_w) * 4)
    # Per batch-row: double-buffered streamed f32 tiles + generous allowance for f32 temps.
    per_row = 2 * (s_p + a_p + out_w) * 4 + 3 * h_p * 4

    tb_vmem = max((VMEM_BUDGET - weight_bytes) // max(per_row, 1), SUB)
    tb_cap = max(min(TB_MAX, tb_vmem) // SUB * SUB, SUB)

    # At least two grid steps when the batch is big enough so the "parallel" axis can be
    # split across both TensorCores on v7x; otherwise minimise batch padding under the cap.
    num_tiles = _cdiv(b8, tb_cap)
    if b8 >= 2 * SUB:
        num_tiles = max(num_tiles, 2)
    tb = _round_up(_cdiv(b8, num_tiles), SUB)
    # (Further knob: rounding tb to a multiple of 256 fills the v6e/v7x MXU M-dim exactly,
    #  at the cost of extra batch padding; padding-minimising 8-alignment is used here.)
    return tb, tb * num_tiles, num_tiles


# ---------------------------------------------------------------------------
# Forward wrapper
# ---------------------------------------------------------------------------
def q_value_net(x, a, params):
    """QValueNet forward. x: [B, state_dim], a: [B, action_dim] -> Q: [B, 1] float32."""
    w1x, w1a = params["w1x"], params["w1a"]
    b1, w2, b2 = params["b1"], params["w2"], params["b2"]
    wo_row, bo_row = params["wo_row"], params["bo_row"]

    B, state_dim = x.shape
    action_dim = a.shape[1]
    S_P, H_P = w1x.shape
    A_P = w1a.shape[0]
    OUT_W = bo_row.shape[1]
    assert state_dim <= S_P and action_dim <= A_P

    TB, B_P, num_tiles = _choose_batch_tiling(B, S_P, A_P, H_P, OUT_W)

    f32 = jnp.float32
    # Only the (narrow) activation tensors are padded per call; no 128-lane concat buffer.
    x_p = _pad2(x.astype(f32), B_P, S_P)
    a_p = _pad2(a.astype(f32), B_P, A_P)

    out = pl.pallas_call(
        _qvalue_kernel,
        out_shape=jax.ShapeDtypeStruct((B_P, OUT_W), f32),
        grid=(num_tiles,),
        in_specs=[
            pl.BlockSpec((TB, S_P), lambda i: (i, 0)),    # x: pipelined over batch
            pl.BlockSpec((TB, A_P), lambda i: (i, 0)),    # a: pipelined over batch
            pl.BlockSpec((S_P, H_P), lambda i: (0, 0)),   # w1 (state rows), resident
            pl.BlockSpec((A_P, H_P), lambda i: (0, 0)),   # w1 (action rows), resident
            pl.BlockSpec((1, H_P), lambda i: (0, 0)),     # b1
            pl.BlockSpec((H_P, H_P), lambda i: (0, 0)),   # w2, resident
            pl.BlockSpec((1, H_P), lambda i: (0, 0)),     # b2
            pl.BlockSpec((1, H_P), lambda i: (0, 0)),     # w_out as a lane row
            pl.BlockSpec((1, OUT_W), lambda i: (0, 0)),   # b_out (replicated to OUT_W lanes)
        ],
        out_specs=pl.BlockSpec((TB, OUT_W), lambda i: (i, 0)),
        compiler_params=pltpu.CompilerParams(
            dimension_semantics=("parallel",),            # shard batch tiles across TCs on v7x
            vmem_limit_bytes=48 * 1024 * 1024,            # explicit budget instead of a TB cap
        ),
    )(x_p, a_p, w1x, w1a, b1, w2, b2, wo_row, bo_row)

    # Strip batch padding and the (small) lane padding of the scalar Q output.
    return out[:B, :1]


# ---------------------------------------------------------------------------
# Init mimicking torch.nn.Linear (uniform +/- 1/sqrt(fan_in)), weights stored [in, out]
# ---------------------------------------------------------------------------
def init_params(key, state_dim, hidden_dim, action_dim):
    ks = jax.random.split(key, 6)

    def lin(kw, kb, fan_in, fan_out):
        bound = 1.0 / jnp.sqrt(jnp.float32(fan_in))
        w = jax.random.uniform(kw, (fan_in, fan_out), jnp.float32, -bound, bound)
        b = jax.random.uniform(kb, (1, fan_out), jnp.float32, -bound, bound)
        return w, b

    in_dim = state_dim + action_dim
    hid = 2 * hidden_dim
    w1, b1 = lin(ks[0], ks[1], in_dim, hid)
    w2, b2 = lin(ks[2], ks[3], hid, hid)
    wo, bo = lin(ks[4], ks[5], hid, 1)
    return w1, b1, w2, b2, wo, bo


if __name__ == "__main__":
    key = jax.random.PRNGKey(0)
    k_x, k_a, k_p = jax.random.split(key, 3)

    batch, state_dim, hidden_dim, action_dim = 2, 4, 32, 2
    x = jax.random.normal(k_x, (batch, state_dim), jnp.float32)
    a = jax.random.normal(k_a, (batch, action_dim), jnp.float32)
    w1, b1, w2, b2, wo, bo = init_params(k_p, state_dim, hidden_dim, action_dim)

    # Weight padding/casting hoisted out of the hot loop.
    prepared = prepare_params(w1, b1, w2, b2, wo, bo,
                              state_dim=state_dim, action_dim=action_dim)

    fwd = jax.jit(q_value_net)
    q = fwd(x, a, prepared)
    jax.block_until_ready(q)
    assert q.shape == (batch, 1), q.shape
    assert q.dtype == jnp.float32

    # Reference 1: emulate the kernel's numerics (bf16 dot inputs, f32 accumulation).
    bf16, f32 = jnp.bfloat16, jnp.float32
    cat = jnp.concatenate([x, a], axis=1)
    hb = jnp.maximum(jnp.dot(cat.astype(bf16), w1.astype(bf16),
                             preferred_element_type=f32) + b1, 0.0)
    hb = jnp.maximum(jnp.dot(hb.astype(bf16), w2.astype(bf16),
                             preferred_element_type=f32) + b2, 0.0)
    q_bf_ref = hb @ wo + bo
    assert jnp.allclose(q, q_bf_ref, atol=5e-3, rtol=5e-3), "Q mismatch vs bf16-emulating ref"

    # Reference 2: full-f32 PyTorch-semantics forward (loose tolerance — bf16 MXU inputs).
    h = jnp.maximum(cat @ w1 + b1, 0.0)
    h = jnp.maximum(h @ w2 + b2, 0.0)
    q_f32_ref = h @ wo + bo
    assert jnp.allclose(q, q_f32_ref, atol=5e-2, rtol=5e-2), "Q mismatch vs f32 ref"

    print("KERNEL_OK")
</pallas_src>

<mosaic_0001>
module attributes {stable_mosaic.version = 11 : i64} {
  func.func @_qvalue_kernel(%arg0: i32, %arg1: memref<8x16xf32, #tpu.memory_space<vmem>>, %arg2: memref<8x16xf32, #tpu.memory_space<vmem>>, %arg3: memref<16x128xbf16, #tpu.memory_space<vmem>>, %arg4: memref<16x128xbf16, #tpu.memory_space<vmem>>, %arg5: memref<1x128xf32, #tpu.memory_space<vmem>>, %arg6: memref<128x128xbf16, #tpu.memory_space<vmem>>, %arg7: memref<1x128xf32, #tpu.memory_space<vmem>>, %arg8: memref<1x128xf32, #tpu.memory_space<vmem>>, %arg9: memref<1x8xf32, #tpu.memory_space<vmem>>, %arg10: memref<8x8xf32, #tpu.memory_space<vmem>>) attributes {dimension_semantics = [#tpu.dimension_semantics<parallel>], iteration_bounds = array<i64: 1>, scalar_prefetch = 0 : i64, scratch_operands = 0 : i64, tpu.core_type = #tpu.core_type<tc>, window_params = [{transform_indices = @transform_0, window_bounds = array<i64: 8, 16>}, {transform_indices = @transform_1, window_bounds = array<i64: 8, 16>}, {pipeline_mode = #tpu.pipeline_mode<synchronous>, transform_indices = @transform_2, window_bounds = array<i64: 16, 128>}, {pipeline_mode = #tpu.pipeline_mode<synchronous>, transform_indices = @transform_3, window_bounds = array<i64: 16, 128>}, {pipeline_mode = #tpu.pipeline_mode<synchronous>, transform_indices = @transform_4, window_bounds = array<i64: 1, 128>}, {pipeline_mode = #tpu.pipeline_mode<synchronous>, transform_indices = @transform_5, window_bounds = array<i64: 128, 128>}, {pipeline_mode = #tpu.pipeline_mode<synchronous>, transform_indices = @transform_6, window_bounds = array<i64: 1, 128>}, {pipeline_mode = #tpu.pipeline_mode<synchronous>, transform_indices = @transform_7, window_bounds = array<i64: 1, 128>}, {pipeline_mode = #tpu.pipeline_mode<synchronous>, transform_indices = @transform_8, window_bounds = array<i64: 1, 8>}, {transform_indices = @transform_9, window_bounds = array<i64: 8, 8>}]} {
    %c0 = arith.constant 0 : index
    %c0_0 = arith.constant 0 : index
    %0 = vector.load %arg1[%c0, %c0_0] : memref<8x16xf32, #tpu.memory_space<vmem>>, vector<8x16xf32>
    %1 = arith.truncf %0 : vector<8x16xf32> to vector<8x16xbf16>
    %c0_1 = arith.constant 0 : index
    %c0_2 = arith.constant 0 : index
    %2 = vector.load %arg3[%c0_1, %c0_2] : memref<16x128xbf16, #tpu.memory_space<vmem>>, vector<16x128xbf16>
    %cst = arith.constant dense<0.000000e+00> : vector<8x128xf32>
    %3 = tpu.matmul %1, %2, %cst {dimension_numbers = #tpu.dot_dimension_numbers<[1], [0], [0], [1], [0, 0, 1, 1], [], []>} : vector<8x16xbf16>, vector<16x128xbf16>, vector<8x128xf32> -> vector<8x128xf32>
    %c0_3 = arith.constant 0 : index
    %c0_4 = arith.constant 0 : index
    %4 = vector.load %arg2[%c0_3, %c0_4] : memref<8x16xf32, #tpu.memory_space<vmem>>, vector<8x16xf32>
    %5 = arith.truncf %4 : vector<8x16xf32> to vector<8x16xbf16>
    %c0_5 = arith.constant 0 : index
    %c0_6 = arith.constant 0 : index
    %6 = vector.load %arg4[%c0_5, %c0_6] : memref<16x128xbf16, #tpu.memory_space<vmem>>, vector<16x128xbf16>
    %cst_7 = arith.constant dense<0.000000e+00> : vector<8x128xf32>
    %7 = tpu.matmul %5, %6, %cst_7 {dimension_numbers = #tpu.dot_dimension_numbers<[1], [0], [0], [1], [0, 0, 1, 1], [], []>} : vector<8x16xbf16>, vector<16x128xbf16>, vector<8x128xf32> -> vector<8x128xf32>
    %8 = arith.addf %3, %7 : vector<8x128xf32>
    %c0_8 = arith.constant 0 : index
    %c0_9 = arith.constant 0 : index
    %9 = vector.load %arg5[%c0_8, %c0_9] : memref<1x128xf32, #tpu.memory_space<vmem>>, vector<1x128xf32>
    %10 = vector.broadcast %9 : vector<1x128xf32> to vector<8x128xf32>
    %11 = arith.addf %8, %10 : vector<8x128xf32>
    %cst_10 = arith.constant 0.000000e+00 : f32
    %12 = vector.broadcast %cst_10 : f32 to vector<8x128xf32>
    %13 = arith.maximumf %11, %12 : vector<8x128xf32>
    %14 = arith.truncf %13 : vector<8x128xf32> to vector<8x128xbf16>
    %c0_11 = arith.constant 0 : index
    %c0_12 = arith.constant 0 : index
    %15 = vector.load %arg6[%c0_11, %c0_12] : memref<128x128xbf16, #tpu.memory_space<vmem>>, vector<128x128xbf16>
    %cst_13 = arith.constant dense<0.000000e+00> : vector<8x128xf32>
    %16 = tpu.matmul %14, %15, %cst_13 {dimension_numbers = #tpu.dot_dimension_numbers<[1], [0], [0], [1], [0, 0, 1, 1], [], []>} : vector<8x128xbf16>, vector<128x128xbf16>, vector<8x128xf32> -> vector<8x128xf32>
    %c0_14 = arith.constant 0 : index
    %c0_15 = arith.constant 0 : index
    %17 = vector.load %arg7[%c0_14, %c0_15] : memref<1x128xf32, #tpu.memory_space<vmem>>, vector<1x128xf32>
    %18 = vector.broadcast %17 : vector<1x128xf32> to vector<8x128xf32>
    %19 = arith.addf %16, %18 : vector<8x128xf32>
    %cst_16 = arith.constant 0.000000e+00 : f32
    %20 = vector.broadcast %cst_16 : f32 to vector<8x128xf32>
    %21 = arith.maximumf %19, %20 : vector<8x128xf32>
    %c0_17 = arith.constant 0 : index
    %c0_18 = arith.constant 0 : index
    %22 = vector.load %arg8[%c0_17, %c0_18] : memref<1x128xf32, #tpu.memory_space<vmem>>, vector<1x128xf32>
    %23 = vector.broadcast %22 : vector<1x128xf32> to vector<8x128xf32>
    %24 = arith.mulf %21, %23 : vector<8x128xf32>
    %cst_19 = arith.constant dense<0.000000e+00> : vector<8xf32>
    %25 = vector.multi_reduction <add>, %24, %cst_19 [1] : vector<8x128xf32> to vector<8xf32>
    %26 = vector.shape_cast %25 : vector<8xf32> to vector<8x1xf32>
    %c0_20 = arith.constant 0 : index
    %c0_21 = arith.constant 0 : index
    %27 = vector.load %arg9[%c0_20, %c0_21] : memref<1x8xf32, #tpu.memory_space<vmem>>, vector<1x8xf32>
    %28 = vector.broadcast %26 : vector<8x1xf32> to vector<8x8xf32>
    %29 = vector.broadcast %27 : vector<1x8xf32> to vector<8x8xf32>
    %30 = arith.addf %28, %29 : vector<8x8xf32>
    %c0_22 = arith.constant 0 : index
    %c0_23 = arith.constant 0 : index
    %31 = vector.load %arg10[%c0_22, %c0_23] : memref<8x8xf32, #tpu.memory_space<vmem>>, vector<8x8xf32>
    tpu.vector_store %arg10[%c0_22, %c0_23], %30 {strides = array<i32>} : memref<8x8xf32, #tpu.memory_space<vmem>>, vector<8x8xf32>,
    return
  }
  func.func @transform_0(%arg0: i32) -> (i32, i32) {
    %c0_i32 = arith.constant 0 : i32
    %c0_i32_0 = arith.constant 0 : i32
    return %arg0, %c0_i32 : i32, i32
  }
  func.func @transform_1(%arg0: i32) -> (i32, i32) {
    %c0_i32 = arith.constant 0 : i32
    %c0_i32_0 = arith.constant 0 : i32
    return %arg0, %c0_i32 : i32, i32
  }
  func.func @transform_2(%arg0: i32) -> (i32, i32) {
    %c0_i32 = arith.constant 0 : i32
    %c0_i32_0 = arith.constant 0 : i32
    %c0_i32_1 = arith.constant 0 : i32
    return %c0_i32, %c0_i32_0 : i32, i32
  }
  func.func @transform_3(%arg0: i32) -> (i32, i32) {
    %c0_i32 = arith.constant 0 : i32
    %c0_i32_0 = arith.constant 0 : i32
    %c0_i32_1 = arith.constant 0 : i32
    return %c0_i32, %c0_i32_0 : i32, i32
  }
  func.func @transform_4(%arg0: i32) -> (i32, i32) {
    %c0_i32 = arith.constant 0 : i32
    %c0_i32_0 = arith.constant 0 : i32
    %c0_i32_1 = arith.constant 0 : i32
    return %c0_i32, %c0_i32_0 : i32, i32
  }
  func.func @transform_5(%arg0: i32) -> (i32, i32) {
    %c0_i32 = arith.constant 0 : i32
    %c0_i32_0 = arith.constant 0 : i32
    %c0_i32_1 = arith.constant 0 : i32
    return %c0_i32, %c0_i32_0 : i32, i32
  }
  func.func @transform_6(%arg0: i32) -> (i32, i32) {
    %c0_i32 = arith.constant 0 : i32
    %c0_i32_0 = arith.constant 0 : i32
    %c0_i32_1 = arith.constant 0 : i32
    return %c0_i32, %c0_i32_0 : i32, i32
  }
  func.func @transform_7(%arg0: i32) -> (i32, i32) {
    %c0_i32 = arith.constant 0 : i32
    %c0_i32_0 = arith.constant 0 : i32
    %c0_i32_1 = arith.constant 0 : i32
    return %c0_i32, %c0_i32_0 : i32, i32
  }
  func.func @transform_8(%arg0: i32) -> (i32, i32) {
    %c0_i32 = arith.constant 0 : i32
    %c0_i32_0 = arith.constant 0 : i32
    %c0_i32_1 = arith.constant 0 : i32
    return %c0_i32, %c0_i32_0 : i32, i32
  }
  func.func @transform_9(%arg0: i32) -> (i32, i32) {
    %c0_i32 = arith.constant 0 : i32
    %c0_i32_0 = arith.constant 0 : i32
    return %arg0, %c0_i32 : i32, i32
  }
}

</mosaic_0001>

<bundles_post_ra>
// kernel: q_value_net.1
= control target key start
LH: loop header
LB: loop body
LE: loop exit
PB: predicated region body
PF: predicated region fallthrough
CT: control target
= control target key end

     0   :  { %14 = vsyncpa [#allocation3], 0  ;;  %s399_s30 = smov [#allocation2]   ;;  %s487_s0 = inlined_call_operand.vmem [shape: f32[8,16], index: 0, kind: input, shape index: {}]   ;;  %s488_s1 = inlined_call_operand.vmem [shape: f32[8,16], index: 1, kind: input, shape index: {}]   ;;  %s489_s2 = inlined_call_operand.vmem [shape: bf16[16,128], index: 2, kind: input, shape index: {}]   ;;  %s490_s3 = inlined_call_operand.vmem [shape: bf16[16,128], index: 3, kind: input, shape index: {}]   ;;  %s491_s4 = inlined_call_operand.vmem [shape: f32[1,128], index: 4, kind: input, shape index: {}]   ;;  %s492_s5 = inlined_call_operand.hbm [shape: bf16[128,128], index: 5, kind: input, shape index: {}]   ;;  %s493_s6 = inlined_call_operand.vmem [shape: f32[1,128], index: 6, kind: input, shape index: {}]   ;;  %s494_s7 = inlined_call_operand.vmem [shape: f32[1,128], index: 7, kind: input, shape index: {}]   ;;  %s495_s8 = inlined_call_operand.vmem [shape: f32[1,8], index: 8, kind: input, shape index: {}]   ;;  %s496_s9 = inlined_call_operand.vmem [shape: f32[8,8], index: 9, kind: output, shape index: {}]  }
   0x1   :  { %s30_s10 = sshll.u32 %s399_s30, 4  ;;  %s31_s10 = int_to_ptr.vmem [resolvable:$true] %s30_s10 }
   0x2   :  { %s385_s11 = scalar_lea.vmem %s31_s10, 1024  ;;  %p390_p1 = scmp.lt.s32.totalorder %s31_s10, %s31_s10 }
   0x3   :  { %p386_p0 = scmp.ne.s32.totalorder %s31_s10, %s385_s11  ;;  %p391_p2 = scmp.lt.s32.totalorder %s385_s11, %s385_s11 }
   0x5   :  { %p392_p3 = por %p391_p2, %p390_p1 }
   0x7   :  { %p393_p4 = pnand %p392_p3, %p386_p0 }
   0x9   :  { %396 = shalt.err (!%p393_p4)
}
   0xa   :  { %s400_s12 = smov 64   ;;  %s401_s13 = smov 4  }
   0xb   :  { %36 = dma.hbm_to_vmem [thread:$0]  %s492_s5, 1024, %s31_s10, [#allocation3], %s400_s12, %s400_s12, %s401_s13  }
   0xc   :  { %397 = dma.done.wait [#allocation3], 1024  }
   0xd   :  { %398 = vsyncadd [#allocation3], 4294966272  ;;  %v402_v0 = vmov 0.0   ;;  %vm403_vm0 = vmmov 0   ;;  %v367_v1 = vld [vmem:[%s490_s3] sm:$0xff]   ;;  %vm61_vm1 = vcmask 130048  }
   0xe   :  { %330 = vmatprep.subr.bf16.mxu1 %v402_v0  ;;  %332 = vmatprep.mubr.msk.bf16.mxu1 %vm403_vm0, %v402_v0  ;;  %v51_v2 = vld [vmem:[%s488_s1] sm:$0xff]  ;;  %v369_v5 = vld [vmem:[#allocation2 + $0x38] sm:$0xff]   ;;  %v370_v6 = vld [vmem:[#allocation2 + $0x30] sm:$0xff]   ;;  %vm294_vm2 = vcmask 64512  }
   0xf   :  { %342 = vmatprep.subr.bf16.mxu0 %v402_v0  ;;  %358 = vmatprep.mubr.msk.bf16.mxu0 %vm403_vm0, %v402_v0  ;;  %v52_v3 = vpack.c.bf16 %v51_v2, %v51_v2  ;;  %v368_v4 = vld [vmem:[%s489_s2] sm:$0xff]   ;;  %v371_v9 = vld [vmem:[#allocation2 + $0x28] sm:$0xff]   ;;  %v373_v11 = vld [vmem:[#allocation2 + $0x18] sm:$0xff]  }
  0x10   :  { %331 = vmatpush3.bf16.msra.mxu1 %v367_v1  ;;  %343 = vmatpush3.bf16.msra.mxu0 %v369_v5  ;;  %v47_v7 = vld [vmem:[%s487_s0] sm:$0xff]  ;;  %v374_v12 = vld [vmem:[#allocation2 + $0x10] sm:$0xff]   ;;  %v375_v13 = vld [vmem:[#allocation2 + $0x8] sm:$0xff]  }
  0x11   :  { %336 = vmatprep.subr.bf16.mxu1 %v402_v0  ;;  %344 = vmatprep.subr.bf16.mxu0 %v402_v0  ;;  %v48_v8 = vpack.c.bf16 %v47_v7, %v47_v7  ;;  %v372_v10 = vld [vmem:[#allocation2 + $0x20] sm:$0xff]  }
  0x12   :  { %v376_v14 = vld [vmem:[#allocation2] sm:$0xff]  }
  0x13   :  { %333 = vmatmul.mubr.msk.bf16.vlgmr.msra.gmra.mxu1 %vm61_vm1, %v52_v3  ;;  %v305_v20 = vld [vmem:[%s491_s4] ss:$0 sm:$0xff] }
  0x14   :  { %337 = vmatpush3.bf16.msra.mxu1 %v368_v4  ;;  %338 = vmatprep.mubr.msk.bf16.mxu1 %vm403_vm0, %v402_v0  ;;  %v306_v28 = vld [vmem:[%s493_s6] ss:$0 sm:$0xff] }
  0x15   :  { %345 = vmatpush3.bf16.msra.mxu0 %v370_v6  ;;  %v315_v32 = vld [vmem:[%s494_s7] ss:$0 sm:$0xff] }
  0x16   :  { %346 = vmatprep.subr.bf16.mxu0 %v402_v0  ;;  %v316_v37 = vld [vmem:[%s495_s8] ss:$0 sm:$0xff] }
  0x19   :  { %347 = vmatpush3.bf16.msra.mxu0 %v371_v9 }
  0x1a   :  { %348 = vmatprep.subr.bf16.mxu0 %v402_v0 }
  0x1b   :  { %339 = vmatmul.mubr.msk.bf16.vlgmr.msra.gmra.mxu1 %vm61_vm1, %v48_v8 }
  0x1d   :  { %349 = vmatpush3.bf16.msra.mxu0 %v372_v10 }
  0x1e   :  { %350 = vmatprep.subr.bf16.mxu0 %v402_v0 }
  0x21   :  { %351 = vmatpush3.bf16.msra.mxu0 %v373_v11 }
  0x22   :  { %352 = vmatprep.subr.bf16.mxu0 %v402_v0 }
  0x25   :  { %353 = vmatpush3.bf16.msra.mxu0 %v374_v12 }
  0x26   :  { %354 = vmatprep.subr.bf16.mxu0 %v402_v0 }
  0x29   :  { %355 = vmatpush3.bf16.msra.mxu0 %v375_v13 }
  0x2a   :  { %356 = vmatprep.subr.bf16.mxu0 %v402_v0 }
  0x2d   :  { %357 = vmatpush3.bf16.msra.mxu0 %v376_v14 }
  0xd3   :  { %v99_v15 = vpop.f32.mrf.mxu1 }
  0xd5   :  { %v334_v16 = vpop.f32.mrf.mxu1 }
  0xd7   :  { %v102_v17 = vpop.f32.mrf.mxu1 }
  0xd9   :  { %v335_v18 = vpop.f32.mrf.mxu1 }
  0xdb   :  { %v148_v19 = vpop.f32.mrf.mxu1 }
  0xdc   :  { %v149_v21 = vadd.f32 %v148_v19, %v99_v15 }
  0xdd   :  { %v340_v22 = vpop.f32.mrf.mxu1 }
  0xde   :  { %v161_v23 = vadd.f32 %v305_v20, %v149_v21 }
  0xdf   :  { %v151_v24 = vpop.f32.mrf.mxu1 }
  0xe0   :  { %v162_v25 = vmax.f32 %v161_v23, 0.0 }
  0xe1   :  { %v341_v26 = vpop.f32.mrf.mxu1 }
  0xe2   :  { %v163_v27 = vpack.c.bf16 %v162_v25, %v162_v25 }
  0xe4   :  { %359 = vmatmul.mubr.bf16.vlgmr.msra.gmra.mxu0 %v163_v27 }
 0x1a4   :  { %v269_v29 = vpop.f32.mrf.mxu0 }
 0x1a5   :  { %v270_v30 = vadd.f32 %v306_v28, %v269_v29 }
 0x1a6   :  { %v360_v31 = vpop.f32.mrf.mxu0 }
 0x1a7   :  { %v275_v33 = vmax.f32 %v270_v30, 0.0 }
 0x1a8   :  { %v272_v34 = vpop.f32.mrf.mxu0 }
 0x1a9   :  { %v283_v35 = vmul.f32 %v315_v32, %v275_v33 }
 0x1aa   :  { %v361_v36 = vpop.f32.mrf.mxu0 }
 0x1ab   :  { %284 = vadd.xlane.f32.xlu0 %v283_v35 }
 0x234   :  { %v285_v38 = vpop.xlane.xlu0 %284 }
 0x235   :  { %v293_v39 = vadd.f32 %v316_v37, %v285_v38 }
 0x237   :  { %295 = vst.msk [vmem:[%s496_s9] sm:$0xff] %vm294_vm2, %v293_v39 }
 0x238   :  { %300 = vsyncpa [#allocation3], 1 }

</bundles_post_ra>
